<compile_context>
chip_gen: v7x
topology: tpu7x:2x2x1
jax: 0.10.0
libtpu: 0.0.40
codegen_flags: <defaults>
</compile_context>

<pallas_src>
import jax
import jax.numpy as jnp
import numpy as np
from jax.experimental import pallas as pl
from jax.experimental.pallas import tpu as pltpu


def _round_up(x, m):
    return ((x + m - 1) // m) * m


# ----------------------------------------------------------------------------
# Fused Pallas kernel: all temporal blocks + head, one call
# ----------------------------------------------------------------------------
def make_tcn_kernel(nb, L, cfgs):
    """cfgs: list of static per-layer dicts with keys
       c_in, c_out, K, d (dilation), p ((K-1)*d), P (p rounded up to 8), has_ds."""

    def kernel(*refs):
        # ---- unpack refs: inputs, output, scratch (order fixed by wrapper) ----
        idx = 0
        x_ref = refs[idx]; idx += 1                      # (nb, L, c_in0) f32
        layer_refs = []
        for cfg in cfgs:
            w1, b1, w2, b2 = refs[idx:idx + 4]; idx += 4  # weights bf16, biases f32
            if cfg["has_ds"]:
                wds, bds = refs[idx:idx + 2]; idx += 2
            else:
                wds = bds = None
            layer_refs.append((w1, b1, w2, b2, wds, bds))
        wlin_ref = refs[idx]; idx += 1                   # (c_last, H) bf16
        blin_ref = refs[idx]; idx += 1                   # (1, H) f32
        o_ref = refs[idx]; idx += 1                      # (nb, H)
        pads = []
        for cfg in cfgs:
            pads.append((refs[idx], refs[idx + 1])); idx += 2

        # ---- zero only the causal pad rows (P is a multiple of 8) ------------
        # Re-done every grid step (not gated on program_id==0) so each
        # TensorCore's private scratch is valid under a "parallel" grid axis.
        for (pad1, pad2), cfg in zip(pads, cfgs):
            P = cfg["P"]
            if P > 0:
                pad1[:, pl.ds(0, P), :] = jnp.zeros((nb, P, cfg["c_in"]), jnp.float32)
                pad2[:, pl.ds(0, P), :] = jnp.zeros((nb, P, cfg["c_out"]), jnp.float32)

        def dilated_causal_conv(pad_ref, h, w_ref, b_ref, cfg):
            """Causal dilated conv + bias: h (nb, L, Cin) f32 -> (nb, L, Cout) f32.

            Each dilation tap is one batch-folded (nb*L, Cin) @ (Cin, Cout)
            bf16 MXU matmul with f32 accumulation."""
            K, d, p, P = cfg["K"], cfg["d"], cfg["p"], cfg["P"]
            c_out = w_ref.shape[-1]
            # store at an 8-aligned sublane offset -> unmasked stores
            pad_ref[:, pl.ds(P, L), :] = h
            xp = pad_ref[...].astype(jnp.bfloat16)       # (nb, P+L, Cin)
            c = xp.shape[-1]

            def tap(j):
                off = P - p + j * d                       # static offset
                return jnp.dot(xp[:, off:off + L, :].reshape(nb * L, c),
                               w_ref[j],
                               preferred_element_type=jnp.float32)

            # tap 0 initializes the accumulator (no zeros + add)
            acc = tap(0)
            for j in range(1, K):
                acc = acc + tap(j)
            return acc.reshape(nb, L, c_out) + b_ref[...]

        # ---- all temporal blocks, activations never leave VMEM ---------------
        h = x_ref[...].astype(jnp.float32)               # (nb, L, c_in0)
        for li, cfg in enumerate(cfgs):
            w1, b1, w2, b2, wds, bds = layer_refs[li]
            pad1, pad2 = pads[li]
            h1 = jnp.maximum(dilated_causal_conv(pad1, h, w1, b1, cfg), 0.0)
            # TODO(synk): dropout is identity (inference / eval mode)
            h2 = jnp.maximum(dilated_causal_conv(pad2, h1, w2, b2, cfg), 0.0)
            if wds is not None:                          # 1x1 downsample conv
                res = (jnp.dot(h.reshape(nb * L, cfg["c_in"]).astype(jnp.bfloat16),
                               wds[...], preferred_element_type=jnp.float32)
                       .reshape(nb, L, cfg["c_out"]) + bds[...])
            else:
                res = h
            h = jnp.maximum(h2 + res, 0.0)

        # ---- head: time-mean in registers, one batched matmul, sigmoid -------
        mean = jnp.mean(h, axis=1)                       # (nb, c_last) f32
        z = jnp.dot(mean.astype(jnp.bfloat16), wlin_ref[...],
                    preferred_element_type=jnp.float32) + blin_ref[...]
        o_ref[...] = jax.nn.sigmoid(z).astype(o_ref.dtype)

    return kernel


# ----------------------------------------------------------------------------
# Wrapper (single pallas_call for the whole network)
# ----------------------------------------------------------------------------
def tcn_forward(x_ncl, params, kernel_size, batch_tile=None):
    """Full TCN forward.  x_ncl: (N, C_in, L) like the PyTorch module.
       Returns (N, hidden_dim)."""
    x = jnp.transpose(x_ncl, (0, 2, 1))                  # -> (N, L, C_in)
    N, L, c_in0 = x.shape
    K = kernel_size
    blocks = params["blocks"]

    # static per-layer configuration
    cfgs = []
    for blk in blocks:
        d = int(blk["dilation"])
        _, c_in, c_out = blk["w1"].shape                 # (K, C_in, C_out)
        p = (K - 1) * d
        P = _round_up(p, 8) if p > 0 else 0              # 8-aligned pad region
        cfgs.append(dict(c_in=c_in, c_out=c_out, K=K, d=d, p=p, P=P,
                         has_ds="wds" in blk))
    c_last = cfgs[-1]["c_out"]
    w_lin = params["w_lin"].astype(jnp.bfloat16)
    b_lin = params["b_lin"]
    H = w_lin.shape[1]

    # batch tile: fold as many samples per grid step as reasonable (nb*L rows
    # per matmul), capped at ~512 rows to bound VMEM / trace size.  nb must
    # divide N.  NOTE(v7x): for 2-TC parts prefer a tile that leaves >= 2
    # "parallel" grid steps when N is large enough.
    if batch_tile is None:
        max_nb = max(1, 512 // max(L, 1))
        nb = 1
        for cand in range(1, min(N, max_nb) + 1):
            if N % cand == 0:
                nb = cand
    else:
        nb = batch_tile
    assert N % nb == 0, "batch tile must divide N"
    grid = (N // nb,)

    in_arrays = [x]
    in_specs = [pl.BlockSpec((nb, L, c_in0), lambda g: (g, 0, 0))]
    for blk, cfg in zip(blocks, cfgs):
        c_in, c_out = cfg["c_in"], cfg["c_out"]
        in_arrays += [blk["w1"].astype(jnp.bfloat16), blk["b1"],
                      blk["w2"].astype(jnp.bfloat16), blk["b2"]]
        in_specs += [
            pl.BlockSpec((K, c_in, c_out), lambda g: (0, 0, 0)),
            pl.BlockSpec((1, c_out), lambda g: (0, 0)),
            pl.BlockSpec((K, c_out, c_out), lambda g: (0, 0, 0)),
            pl.BlockSpec((1, c_out), lambda g: (0, 0)),
        ]
        if cfg["has_ds"]:
            in_arrays += [blk["wds"].astype(jnp.bfloat16), blk["bds"]]
            in_specs += [
                pl.BlockSpec((c_in, c_out), lambda g: (0, 0)),
                pl.BlockSpec((1, c_out), lambda g: (0, 0)),
            ]
    in_arrays += [w_lin, b_lin]
    in_specs += [
        pl.BlockSpec((c_last, H), lambda g: (0, 0)),
        pl.BlockSpec((1, H), lambda g: (0, 0)),
    ]

    # VMEM scratch: two causal-pad buffers per layer (f32).  Tiny at this
    # config; for production L/C re-budget for v7x's 64 MiB VMEM (bf16 scratch,
    # L-tiling with a (K-1)*d-row halo).
    scratch_shapes = []
    for cfg in cfgs:
        scratch_shapes.append(pltpu.VMEM((nb, cfg["P"] + L, cfg["c_in"]), jnp.float32))
        scratch_shapes.append(pltpu.VMEM((nb, cfg["P"] + L, cfg["c_out"]), jnp.float32))

    kernel = make_tcn_kernel(nb, L, cfgs)
    return pl.pallas_call(
        kernel,
        out_shape=jax.ShapeDtypeStruct((N, H), x.dtype),
        grid_spec=pltpu.PrefetchScalarGridSpec(
            num_scalar_prefetch=0,
            grid=grid,
            in_specs=in_specs,
            out_specs=pl.BlockSpec((nb, H), lambda g: (g, 0)),
            scratch_shapes=scratch_shapes,
        ),
        compiler_params=pltpu.CompilerParams(
            dimension_semantics=("parallel",),
            vmem_limit_bytes=32 * 1024 * 1024,
        ),
    )(*in_arrays)


# ----------------------------------------------------------------------------
# Deterministic parameter construction
# ----------------------------------------------------------------------------
def weight_norm_reparam(v):
    """Effective conv weight of torch weight_norm: w = g * v / ||v|| (dim=0),
    with g initialized to ||v|| -> w == v at init.  v has torch layout
    (C_out, C_in, K)."""
    norm = jnp.sqrt(jnp.sum(v * v, axis=(1, 2), keepdims=True))
    g = norm                                              # weight_norm's init of g
    return g * v / norm


def init_params(key, input_size, hidden_dim, num_channels, kernel_size,
                dilation_size):
    num_levels = len(num_channels)
    dilations = [dilation_size ** i for i in range(num_levels)]
    blocks = []
    for i in range(num_levels):
        c_in = input_size if i == 0 else num_channels[i - 1]
        c_out = num_channels[i]
        key, k1, k2, k3, k4, k5, k6 = jax.random.split(key, 7)
        # torch conv weight layout (C_out, C_in, K), init normal(0, 0.01)
        v1 = 0.01 * jax.random.normal(k1, (c_out, c_in, kernel_size), jnp.float32)
        v2 = 0.01 * jax.random.normal(k2, (c_out, c_out, kernel_size), jnp.float32)
        w1 = jnp.transpose(weight_norm_reparam(v1), (2, 1, 0))   # (K, C_in, C_out)
        w2 = jnp.transpose(weight_norm_reparam(v2), (2, 1, 0))   # (K, C_out, C_out)
        b1 = 0.01 * jax.random.normal(k3, (1, c_out), jnp.float32)
        b2 = 0.01 * jax.random.normal(k4, (1, c_out), jnp.float32)
        blk = {"w1": w1, "b1": b1, "w2": w2, "b2": b2, "dilation": dilations[i]}
        if c_in != c_out:
            vds = 0.01 * jax.random.normal(k5, (c_out, c_in, 1), jnp.float32)
            blk["wds"] = jnp.transpose(vds[:, :, 0], (1, 0))     # (C_in, C_out)
            blk["bds"] = 0.01 * jax.random.normal(k6, (1, c_out), jnp.float32)
        blocks.append(blk)

    key, kw, kb = jax.random.split(key, 3)
    w_lin = 0.1 * jax.random.normal(kw, (num_channels[-1], hidden_dim), jnp.float32)
    b_lin = 0.1 * jax.random.normal(kb, (1, hidden_dim), jnp.float32)
    return {"blocks": blocks, "w_lin": w_lin, "b_lin": b_lin}


# ----------------------------------------------------------------------------
# Pure-JAX reference (same math, f32, no Pallas) for a correctness check
# ----------------------------------------------------------------------------
def ref_forward(x_ncl, params, kernel_size):
    x = jnp.transpose(x_ncl, (0, 2, 1))                   # (N, L, C)
    K = kernel_size
    for blk in params["blocks"]:
        d = blk["dilation"]
        p = (K - 1) * d
        N, L, _ = x.shape

        def conv(inp, w, b):
            ipad = jnp.pad(inp, ((0, 0), (p, 0), (0, 0)))
            acc = sum(jnp.einsum("nlc,cd->nld",
                                 ipad[:, j * d: j * d + L, :], w[j])
                      for j in range(K))
            return acc + b
        h1 = jax.nn.relu(conv(x, blk["w1"], blk["b1"]))
        h2 = jax.nn.relu(conv(h1, blk["w2"], blk["b2"]))
        res = (jnp.einsum("nlc,cd->nld", x, blk["wds"]) + blk["bds"]
               if "wds" in blk else x)
        x = jax.nn.relu(h2 + res)
    z = jnp.einsum("nlc,ch->nlh", x, params["w_lin"]) + params["b_lin"]
    return jax.nn.sigmoid(jnp.mean(z, axis=1))


# ----------------------------------------------------------------------------
if __name__ == "__main__":
    # Small config consistent with TCN(input_size, hidden_dim, num_channels,
    #                                  kernel_size, dropout, dilation_size)
    input_size = 4
    hidden_dim = 32
    num_channels = [8, 8]
    kernel_size = 2
    dilation_size = 2
    N, L = 2, 16

    key = jax.random.PRNGKey(0)
    key, kx = jax.random.split(key)
    x = jax.random.normal(kx, (N, input_size, L), jnp.float32)   # (N, C_in, L)

    params = init_params(key, input_size, hidden_dim, num_channels,
                         kernel_size, dilation_size)

    out = tcn_forward(x, params, kernel_size)
    out = jax.block_until_ready(out)

    ref = jax.block_until_ready(ref_forward(x, params, kernel_size))
    assert out.shape == (N, hidden_dim)
    # bf16 MXU operands in the kernel vs. f32 reference -> loosened tolerance
    np.testing.assert_allclose(np.asarray(out), np.asarray(ref),
                               rtol=2e-2, atol=2e-3)

    print("KERNEL_OK")
</pallas_src>

<mosaic_0001>
module attributes {stable_mosaic.version = 11 : i64} {
  func.func @kernel(%arg0: i32, %arg1: memref<2x16x4xf32, #tpu.memory_space<vmem>>, %arg2: memref<2x4x8xbf16, #tpu.memory_space<vmem>>, %arg3: memref<1x8xf32, #tpu.memory_space<vmem>>, %arg4: memref<2x8x8xbf16, #tpu.memory_space<vmem>>, %arg5: memref<1x8xf32, #tpu.memory_space<vmem>>, %arg6: memref<4x8xbf16, #tpu.memory_space<vmem>>, %arg7: memref<1x8xf32, #tpu.memory_space<vmem>>, %arg8: memref<2x8x8xbf16, #tpu.memory_space<vmem>>, %arg9: memref<1x8xf32, #tpu.memory_space<vmem>>, %arg10: memref<2x8x8xbf16, #tpu.memory_space<vmem>>, %arg11: memref<1x8xf32, #tpu.memory_space<vmem>>, %arg12: memref<8x32xbf16, #tpu.memory_space<vmem>>, %arg13: memref<1x32xf32, #tpu.memory_space<vmem>>, %arg14: memref<2x32xf32, #tpu.memory_space<vmem>>, %arg15: memref<2x24x4xf32, #tpu.memory_space<vmem>>, %arg16: memref<2x24x8xf32, #tpu.memory_space<vmem>>, %arg17: memref<2x24x8xf32, #tpu.memory_space<vmem>>, %arg18: memref<2x24x8xf32, #tpu.memory_space<vmem>>) attributes {dimension_semantics = [#tpu.dimension_semantics<parallel>], iteration_bounds = array<i64: 1>, scalar_prefetch = 0 : i64, scratch_operands = 4 : i64, tpu.core_type = #tpu.core_type<tc>, window_params = [{transform_indices = @transform_0, window_bounds = array<i64: 2, 16, 4>}, {pipeline_mode = #tpu.pipeline_mode<synchronous>, transform_indices = @transform_1, window_bounds = array<i64: 2, 4, 8>}, {pipeline_mode = #tpu.pipeline_mode<synchronous>, transform_indices = @transform_2, window_bounds = array<i64: 1, 8>}, {pipeline_mode = #tpu.pipeline_mode<synchronous>, transform_indices = @transform_3, window_bounds = array<i64: 2, 8, 8>}, {pipeline_mode = #tpu.pipeline_mode<synchronous>, transform_indices = @transform_4, window_bounds = array<i64: 1, 8>}, {pipeline_mode = #tpu.pipeline_mode<synchronous>, transform_indices = @transform_5, window_bounds = array<i64: 4, 8>}, {pipeline_mode = #tpu.pipeline_mode<synchronous>, transform_indices = @transform_6, window_bounds = array<i64: 1, 8>}, {pipeline_mode = #tpu.pipeline_mode<synchronous>, transform_indices = @transform_7, window_bounds = array<i64: 2, 8, 8>}, {pipeline_mode = #tpu.pipeline_mode<synchronous>, transform_indices = @transform_8, window_bounds = array<i64: 1, 8>}, {pipeline_mode = #tpu.pipeline_mode<synchronous>, transform_indices = @transform_9, window_bounds = array<i64: 2, 8, 8>}, {pipeline_mode = #tpu.pipeline_mode<synchronous>, transform_indices = @transform_10, window_bounds = array<i64: 1, 8>}, {pipeline_mode = #tpu.pipeline_mode<synchronous>, transform_indices = @transform_11, window_bounds = array<i64: 8, 32>}, {pipeline_mode = #tpu.pipeline_mode<synchronous>, transform_indices = @transform_12, window_bounds = array<i64: 1, 32>}, {transform_indices = @transform_13, window_bounds = array<i64: 2, 32>}]} {
    %cst = arith.constant 0.000000e+00 : f32
    %0 = vector.broadcast %cst : f32 to vector<2x8x4xf32>
    %c0 = arith.constant 0 : index
    %c0_0 = arith.constant 0 : index
    %c0_1 = arith.constant 0 : index
    %1 = vector.load %arg15[%c0, %c0_0, %c0_1] : memref<2x24x4xf32, #tpu.memory_space<vmem>>, vector<2x8x4xf32>
    tpu.vector_store %arg15[%c0, %c0_0, %c0_1], %0 {strides = array<i32>} : memref<2x24x4xf32, #tpu.memory_space<vmem>>, vector<2x8x4xf32>,
    %cst_2 = arith.constant 0.000000e+00 : f32
    %2 = vector.broadcast %cst_2 : f32 to vector<2x8x8xf32>
    %c0_3 = arith.constant 0 : index
    %c0_4 = arith.constant 0 : index
    %c0_5 = arith.constant 0 : index
    %3 = vector.load %arg16[%c0_3, %c0_4, %c0_5] : memref<2x24x8xf32, #tpu.memory_space<vmem>>, vector<2x8x8xf32>
    tpu.vector_store %arg16[%c0_3, %c0_4, %c0_5], %2 {strides = array<i32>} : memref<2x24x8xf32, #tpu.memory_space<vmem>>, vector<2x8x8xf32>,
    %cst_6 = arith.constant 0.000000e+00 : f32
    %4 = vector.broadcast %cst_6 : f32 to vector<2x8x8xf32>
    %c0_7 = arith.constant 0 : index
    %c0_8 = arith.constant 0 : index
    %c0_9 = arith.constant 0 : index
    %5 = vector.load %arg17[%c0_7, %c0_8, %c0_9] : memref<2x24x8xf32, #tpu.memory_space<vmem>>, vector<2x8x8xf32>
    tpu.vector_store %arg17[%c0_7, %c0_8, %c0_9], %4 {strides = array<i32>} : memref<2x24x8xf32, #tpu.memory_space<vmem>>, vector<2x8x8xf32>,
    %cst_10 = arith.constant 0.000000e+00 : f32
    %6 = vector.broadcast %cst_10 : f32 to vector<2x8x8xf32>
    %c0_11 = arith.constant 0 : index
    %c0_12 = arith.constant 0 : index
    %c0_13 = arith.constant 0 : index
    %7 = vector.load %arg18[%c0_11, %c0_12, %c0_13] : memref<2x24x8xf32, #tpu.memory_space<vmem>>, vector<2x8x8xf32>
    tpu.vector_store %arg18[%c0_11, %c0_12, %c0_13], %6 {strides = array<i32>} : memref<2x24x8xf32, #tpu.memory_space<vmem>>, vector<2x8x8xf32>,
    %c0_14 = arith.constant 0 : index
    %c0_15 = arith.constant 0 : index
    %c0_16 = arith.constant 0 : index
    %8 = vector.load %arg1[%c0_14, %c0_15, %c0_16] : memref<2x16x4xf32, #tpu.memory_space<vmem>>, vector<2x16x4xf32>
    %c0_17 = arith.constant 0 : index
    %c8 = arith.constant 8 : index
    %c0_18 = arith.constant 0 : index
    %9 = vector.load %arg15[%c0_17, %c8, %c0_18] : memref<2x24x4xf32, #tpu.memory_space<vmem>>, vector<2x16x4xf32>
    tpu.vector_store %arg15[%c0_17, %c8, %c0_18], %8 {strides = array<i32>} : memref<2x24x4xf32, #tpu.memory_space<vmem>>, vector<2x16x4xf32>,
    %c0_19 = arith.constant 0 : index
    %c0_20 = arith.constant 0 : index
    %c0_21 = arith.constant 0 : index
    %10 = vector.load %arg15[%c0_19, %c0_20, %c0_21] : memref<2x24x4xf32, #tpu.memory_space<vmem>>, vector<2x24x4xf32>
    %11 = arith.truncf %10 : vector<2x24x4xf32> to vector<2x24x4xbf16>
    %12 = vector.extract_strided_slice %11 {offsets = [0, 7, 0], sizes = [2, 16, 4], strides = [1, 1, 1]} : vector<2x24x4xbf16> to vector<2x16x4xbf16>
    %13 = vector.shape_cast %12 : vector<2x16x4xbf16> to vector<32x4xbf16>
    %c0_22 = arith.constant 0 : index
    %c0_23 = arith.constant 0 : index
    %c0_24 = arith.constant 0 : index
    %14 = vector.load %arg2[%c0_22, %c0_23, %c0_24] : memref<2x4x8xbf16, #tpu.memory_space<vmem>>, vector<1x4x8xbf16>
    %15 = vector.shape_cast %14 : vector<1x4x8xbf16> to vector<4x8xbf16>
    %cst_25 = arith.constant dense<0.000000e+00> : vector<32x8xf32>
    %16 = tpu.matmul %13, %15, %cst_25 {dimension_numbers = #tpu.dot_dimension_numbers<[1], [0], [0], [1], [0, 0, 1, 1], [], []>} : vector<32x4xbf16>, vector<4x8xbf16>, vector<32x8xf32> -> vector<32x8xf32>
    %17 = vector.extract_strided_slice %11 {offsets = [0, 8, 0], sizes = [2, 16, 4], strides = [1, 1, 1]} : vector<2x24x4xbf16> to vector<2x16x4xbf16>
    %18 = vector.shape_cast %17 : vector<2x16x4xbf16> to vector<32x4xbf16>
    %c1 = arith.constant 1 : index
    %c0_26 = arith.constant 0 : index
    %c0_27 = arith.constant 0 : index
    %19 = vector.load %arg2[%c1, %c0_26, %c0_27] : memref<2x4x8xbf16, #tpu.memory_space<vmem>>, vector<1x4x8xbf16>
    %20 = vector.shape_cast %19 : vector<1x4x8xbf16> to vector<4x8xbf16>
    %cst_28 = arith.constant dense<0.000000e+00> : vector<32x8xf32>
    %21 = tpu.matmul %18, %20, %cst_28 {dimension_numbers = #tpu.dot_dimension_numbers<[1], [0], [0], [1], [0, 0, 1, 1], [], []>} : vector<32x4xbf16>, vector<4x8xbf16>, vector<32x8xf32> -> vector<32x8xf32>
    %22 = arith.addf %16, %21 : vector<32x8xf32>
    %23 = vector.shape_cast %22 : vector<32x8xf32> to vector<2x16x8xf32>
    %c0_29 = arith.constant 0 : index
    %c0_30 = arith.constant 0 : index
    %24 = vector.load %arg3[%c0_29, %c0_30] : memref<1x8xf32, #tpu.memory_space<vmem>>, vector<1x8xf32>
    %25 = vector.shape_cast %24 : vector<1x8xf32> to vector<1x1x8xf32>
    %26 = vector.broadcast %25 : vector<1x1x8xf32> to vector<2x16x8xf32>
    %27 = arith.addf %23, %26 : vector<2x16x8xf32>
    %cst_31 = arith.constant 0.000000e+00 : f32
    %28 = vector.broadcast %cst_31 : f32 to vector<2x16x8xf32>
    %29 = arith.maximumf %27, %28 : vector<2x16x8xf32>
    %c0_32 = arith.constant 0 : index
    %c8_33 = arith.constant 8 : index
    %c0_34 = arith.constant 0 : index
    %30 = vector.load %arg16[%c0_32, %c8_33, %c0_34] : memref<2x24x8xf32, #tpu.memory_space<vmem>>, vector<2x16x8xf32>
    tpu.vector_store %arg16[%c0_32, %c8_33, %c0_34], %29 {strides = array<i32>} : memref<2x24x8xf32, #tpu.memory_space<vmem>>, vector<2x16x8xf32>,
    %c0_35 = arith.constant 0 : index
    %c0_36 = arith.constant 0 : index
    %c0_37 = arith.constant 0 : index
    %31 = vector.load %arg16[%c0_35, %c0_36, %c0_37] : memref<2x24x8xf32, #tpu.memory_space<vmem>>, vector<2x24x8xf32>
    %32 = arith.truncf %31 : vector<2x24x8xf32> to vector<2x24x8xbf16>
    %33 = vector.extract_strided_slice %32 {offsets = [0, 7, 0], sizes = [2, 16, 8], strides = [1, 1, 1]} : vector<2x24x8xbf16> to vector<2x16x8xbf16>
    %34 = vector.shape_cast %33 : vector<2x16x8xbf16> to vector<32x8xbf16>
    %c0_38 = arith.constant 0 : index
    %c0_39 = arith.constant 0 : index
    %c0_40 = arith.constant 0 : index
    %35 = vector.load %arg4[%c0_38, %c0_39, %c0_40] : memref<2x8x8xbf16, #tpu.memory_space<vmem>>, vector<1x8x8xbf16>
    %36 = vector.shape_cast %35 : vector<1x8x8xbf16> to vector<8x8xbf16>
    %cst_41 = arith.constant dense<0.000000e+00> : vector<32x8xf32>
    %37 = tpu.matmul %34, %36, %cst_41 {dimension_numbers = #tpu.dot_dimension_numbers<[1], [0], [0], [1], [0, 0, 1, 1], [], []>} : vector<32x8xbf16>, vector<8x8xbf16>, vector<32x8xf32> -> vector<32x8xf32>
    %38 = vector.extract_strided_slice %32 {offsets = [0, 8, 0], sizes = [2, 16, 8], strides = [1, 1, 1]} : vector<2x24x8xbf16> to vector<2x16x8xbf16>
    %39 = vector.shape_cast %38 : vector<2x16x8xbf16> to vector<32x8xbf16>
    %c1_42 = arith.constant 1 : index
    %c0_43 = arith.constant 0 : index
    %c0_44 = arith.constant 0 : index
    %40 = vector.load %arg4[%c1_42, %c0_43, %c0_44] : memref<2x8x8xbf16, #tpu.memory_space<vmem>>, vector<1x8x8xbf16>
    %41 = vector.shape_cast %40 : vector<1x8x8xbf16> to vector<8x8xbf16>
    %cst_45 = arith.constant dense<0.000000e+00> : vector<32x8xf32>
    %42 = tpu.matmul %39, %41, %cst_45 {dimension_numbers = #tpu.dot_dimension_numbers<[1], [0], [0], [1], [0, 0, 1, 1], [], []>} : vector<32x8xbf16>, vector<8x8xbf16>, vector<32x8xf32> -> vector<32x8xf32>
    %43 = arith.addf %37, %42 : vector<32x8xf32>
    %44 = vector.shape_cast %43 : vector<32x8xf32> to vector<2x16x8xf32>
    %c0_46 = arith.constant 0 : index
    %c0_47 = arith.constant 0 : index
    %45 = vector.load %arg5[%c0_46, %c0_47] : memref<1x8xf32, #tpu.memory_space<vmem>>, vector<1x8xf32>
    %46 = vector.shape_cast %45 : vector<1x8xf32> to vector<1x1x8xf32>
    %47 = vector.broadcast %46 : vector<1x1x8xf32> to vector<2x16x8xf32>
    %48 = arith.addf %44, %47 : vector<2x16x8xf32>
    %cst_48 = arith.constant 0.000000e+00 : f32
    %49 = vector.broadcast %cst_48 : f32 to vector<2x16x8xf32>
    %50 = arith.maximumf %48, %49 : vector<2x16x8xf32>
    %51 = vector.shape_cast %8 : vector<2x16x4xf32> to vector<32x4xf32>
    %52 = arith.truncf %51 : vector<32x4xf32> to vector<32x4xbf16>
    %c0_49 = arith.constant 0 : index
    %c0_50 = arith.constant 0 : index
    %53 = vector.load %arg6[%c0_49, %c0_50] : memref<4x8xbf16, #tpu.memory_space<vmem>>, vector<4x8xbf16>
    %cst_51 = arith.constant dense<0.000000e+00> : vector<32x8xf32>
    %54 = tpu.matmul %52, %53, %cst_51 {dimension_numbers = #tpu.dot_dimension_numbers<[1], [0], [0], [1], [0, 0, 1, 1], [], []>} : vector<32x4xbf16>, vector<4x8xbf16>, vector<32x8xf32> -> vector<32x8xf32>
    %55 = vector.shape_cast %54 : vector<32x8xf32> to vector<2x16x8xf32>
    %c0_52 = arith.constant 0 : index
    %c0_53 = arith.constant 0 : index
    %56 = vector.load %arg7[%c0_52, %c0_53] : memref<1x8xf32, #tpu.memory_space<vmem>>, vector<1x8xf32>
    %57 = vector.shape_cast %56 : vector<1x8xf32> to vector<1x1x8xf32>
    %58 = vector.broadcast %57 : vector<1x1x8xf32> to vector<2x16x8xf32>
    %59 = arith.addf %55, %58 : vector<2x16x8xf32>
    %60 = arith.addf %50, %59 : vector<2x16x8xf32>
    %cst_54 = arith.constant 0.000000e+00 : f32
    %61 = vector.broadcast %cst_54 : f32 to vector<2x16x8xf32>
    %62 = arith.maximumf %60, %61 : vector<2x16x8xf32>
    %c0_55 = arith.constant 0 : index
    %c8_56 = arith.constant 8 : index
    %c0_57 = arith.constant 0 : index
    %63 = vector.load %arg17[%c0_55, %c8_56, %c0_57] : memref<2x24x8xf32, #tpu.memory_space<vmem>>, vector<2x16x8xf32>
    tpu.vector_store %arg17[%c0_55, %c8_56, %c0_57], %62 {strides = array<i32>} : memref<2x24x8xf32, #tpu.memory_space<vmem>>, vector<2x16x8xf32>,
    %c0_58 = arith.constant 0 : index
    %c0_59 = arith.constant 0 : index
    %c0_60 = arith.constant 0 : index
    %64 = vector.load %arg17[%c0_58, %c0_59, %c0_60] : memref<2x24x8xf32, #tpu.memory_space<vmem>>, vector<2x24x8xf32>
    %65 = arith.truncf %64 : vector<2x24x8xf32> to vector<2x24x8xbf16>
    %66 = vector.extract_strided_slice %65 {offsets = [0, 6, 0], sizes = [2, 16, 8], strides = [1, 1, 1]} : vector<2x24x8xbf16> to vector<2x16x8xbf16>
    %67 = vector.shape_cast %66 : vector<2x16x8xbf16> to vector<32x8xbf16>
    %c0_61 = arith.constant 0 : index
    %c0_62 = arith.constant 0 : index
    %c0_63 = arith.constant 0 : index
    %68 = vector.load %arg8[%c0_61, %c0_62, %c0_63] : memref<2x8x8xbf16, #tpu.memory_space<vmem>>, vector<1x8x8xbf16>
    %69 = vector.shape_cast %68 : vector<1x8x8xbf16> to vector<8x8xbf16>
    %cst_64 = arith.constant dense<0.000000e+00> : vector<32x8xf32>
    %70 = tpu.matmul %67, %69, %cst_64 {dimension_numbers = #tpu.dot_dimension_numbers<[1], [0], [0], [1], [0, 0, 1, 1], [], []>} : vector<32x8xbf16>, vector<8x8xbf16>, vector<32x8xf32> -> vector<32x8xf32>
    %71 = vector.extract_strided_slice %65 {offsets = [0, 8, 0], sizes = [2, 16, 8], strides = [1, 1, 1]} : vector<2x24x8xbf16> to vector<2x16x8xbf16>
    %72 = vector.shape_cast %71 : vector<2x16x8xbf16> to vector<32x8xbf16>
    %c1_65 = arith.constant 1 : index
    %c0_66 = arith.constant 0 : index
    %c0_67 = arith.constant 0 : index
    %73 = vector.load %arg8[%c1_65, %c0_66, %c0_67] : memref<2x8x8xbf16, #tpu.memory_space<vmem>>, vector<1x8x8xbf16>
    %74 = vector.shape_cast %73 : vector<1x8x8xbf16> to vector<8x8xbf16>
    %cst_68 = arith.constant dense<0.000000e+00> : vector<32x8xf32>
    %75 = tpu.matmul %72, %74, %cst_68 {dimension_numbers = #tpu.dot_dimension_numbers<[1], [0], [0], [1], [0, 0, 1, 1], [], []>} : vector<32x8xbf16>, vector<8x8xbf16>, vector<32x8xf32> -> vector<32x8xf32>
    %76 = arith.addf %70, %75 : vector<32x8xf32>
    %77 = vector.shape_cast %76 : vector<32x8xf32> to vector<2x16x8xf32>
    %c0_69 = arith.constant 0 : index
    %c0_70 = arith.constant 0 : index
    %78 = vector.load %arg9[%c0_69, %c0_70] : memref<1x8xf32, #tpu.memory_space<vmem>>, vector<1x8xf32>
    %79 = vector.shape_cast %78 : vector<1x8xf32> to vector<1x1x8xf32>
    %80 = vector.broadcast %79 : vector<1x1x8xf32> to vector<2x16x8xf32>
    %81 = arith.addf %77, %80 : vector<2x16x8xf32>
    %cst_71 = arith.constant 0.000000e+00 : f32
    %82 = vector.broadcast %cst_71 : f32 to vector<2x16x8xf32>
    %83 = arith.maximumf %81, %82 : vector<2x16x8xf32>
    %c0_72 = arith.constant 0 : index
    %c8_73 = arith.constant 8 : index
    %c0_74 = arith.constant 0 : index
    %84 = vector.load %arg18[%c0_72, %c8_73, %c0_74] : memref<2x24x8xf32, #tpu.memory_space<vmem>>, vector<2x16x8xf32>
    tpu.vector_store %arg18[%c0_72, %c8_73, %c0_74], %83 {strides = array<i32>} : memref<2x24x8xf32, #tpu.memory_space<vmem>>, vector<2x16x8xf32>,
    %c0_75 = arith.constant 0 : index
    %c0_76 = arith.constant 0 : index
    %c0_77 = arith.constant 0 : index
    %85 = vector.load %arg18[%c0_75, %c0_76, %c0_77] : memref<2x24x8xf32, #tpu.memory_space<vmem>>, vector<2x24x8xf32>
    %86 = arith.truncf %85 : vector<2x24x8xf32> to vector<2x24x8xbf16>
    %87 = vector.extract_strided_slice %86 {offsets = [0, 6, 0], sizes = [2, 16, 8], strides = [1, 1, 1]} : vector<2x24x8xbf16> to vector<2x16x8xbf16>
    %88 = vector.shape_cast %87 : vector<2x16x8xbf16> to vector<32x8xbf16>
    %c0_78 = arith.constant 0 : index
    %c0_79 = arith.constant 0 : index
    %c0_80 = arith.constant 0 : index
    %89 = vector.load %arg10[%c0_78, %c0_79, %c0_80] : memref<2x8x8xbf16, #tpu.memory_space<vmem>>, vector<1x8x8xbf16>
    %90 = vector.shape_cast %89 : vector<1x8x8xbf16> to vector<8x8xbf16>
    %cst_81 = arith.constant dense<0.000000e+00> : vector<32x8xf32>
    %91 = tpu.matmul %88, %90, %cst_81 {dimension_numbers = #tpu.dot_dimension_numbers<[1], [0], [0], [1], [0, 0, 1, 1], [], []>} : vector<32x8xbf16>, vector<8x8xbf16>, vector<32x8xf32> -> vector<32x8xf32>
    %92 = vector.extract_strided_slice %86 {offsets = [0, 8, 0], sizes = [2, 16, 8], strides = [1, 1, 1]} : vector<2x24x8xbf16> to vector<2x16x8xbf16>
    %93 = vector.shape_cast %92 : vector<2x16x8xbf16> to vector<32x8xbf16>
    %c1_82 = arith.constant 1 : index
    %c0_83 = arith.constant 0 : index
    %c0_84 = arith.constant 0 : index
    %94 = vector.load %arg10[%c1_82, %c0_83, %c0_84] : memref<2x8x8xbf16, #tpu.memory_space<vmem>>, vector<1x8x8xbf16>
    %95 = vector.shape_cast %94 : vector<1x8x8xbf16> to vector<8x8xbf16>
    %cst_85 = arith.constant dense<0.000000e+00> : vector<32x8xf32>
    %96 = tpu.matmul %93, %95, %cst_85 {dimension_numbers = #tpu.dot_dimension_numbers<[1], [0], [0], [1], [0, 0, 1, 1], [], []>} : vector<32x8xbf16>, vector<8x8xbf16>, vector<32x8xf32> -> vector<32x8xf32>
    %97 = arith.addf %91, %96 : vector<32x8xf32>
    %98 = vector.shape_cast %97 : vector<32x8xf32> to vector<2x16x8xf32>
    %c0_86 = arith.constant 0 : index
    %c0_87 = arith.constant 0 : index
    %99 = vector.load %arg11[%c0_86, %c0_87] : memref<1x8xf32, #tpu.memory_space<vmem>>, vector<1x8xf32>
    %100 = vector.shape_cast %99 : vector<1x8xf32> to vector<1x1x8xf32>
    %101 = vector.broadcast %100 : vector<1x1x8xf32> to vector<2x16x8xf32>
    %102 = arith.addf %98, %101 : vector<2x16x8xf32>
    %cst_88 = arith.constant 0.000000e+00 : f32
    %103 = vector.broadcast %cst_88 : f32 to vector<2x16x8xf32>
    %104 = arith.maximumf %102, %103 : vector<2x16x8xf32>
    %105 = arith.addf %104, %62 : vector<2x16x8xf32>
    %cst_89 = arith.constant 0.000000e+00 : f32
    %106 = vector.broadcast %cst_89 : f32 to vector<2x16x8xf32>
    %107 = arith.maximumf %105, %106 : vector<2x16x8xf32>
    %cst_90 = arith.constant dense<0.000000e+00> : vector<2x8xf32>
    %108 = vector.multi_reduction <add>, %107, %cst_90 [1] : vector<2x16x8xf32> to vector<2x8xf32>
    %cst_91 = arith.constant 1.600000e+01 : f32
    %109 = vector.broadcast %cst_91 : f32 to vector<2x8xf32>
    %110 = arith.divf %108, %109 : vector<2x8xf32>
    %111 = arith.truncf %110 : vector<2x8xf32> to vector<2x8xbf16>
    %c0_92 = arith.constant 0 : index
    %c0_93 = arith.constant 0 : index
    %112 = vector.load %arg12[%c0_92, %c0_93] : memref<8x32xbf16, #tpu.memory_space<vmem>>, vector<8x32xbf16>
    %cst_94 = arith.constant dense<0.000000e+00> : vector<2x32xf32>
    %113 = tpu.matmul %111, %112, %cst_94 {dimension_numbers = #tpu.dot_dimension_numbers<[1], [0], [0], [1], [0, 0, 1, 1], [], []>} : vector<2x8xbf16>, vector<8x32xbf16>, vector<2x32xf32> -> vector<2x32xf32>
    %c0_95 = arith.constant 0 : index
    %c0_96 = arith.constant 0 : index
    %114 = vector.load %arg13[%c0_95, %c0_96] : memref<1x32xf32, #tpu.memory_space<vmem>>, vector<1x32xf32>
    %115 = vector.broadcast %114 : vector<1x32xf32> to vector<2x32xf32>
    %116 = arith.addf %113, %115 : vector<2x32xf32>
    %117 = arith.negf %116 : vector<2x32xf32>
    %118 = math.exp %117 : vector<2x32xf32>
    %cst_97 = arith.constant 1.000000e+00 : f32
    %119 = vector.broadcast %cst_97 : f32 to vector<2x32xf32>
    %120 = arith.addf %119, %118 : vector<2x32xf32>
    %121 = arith.divf %119, %120 : vector<2x32xf32>
    %c0_98 = arith.constant 0 : index
    %c0_99 = arith.constant 0 : index
    %122 = vector.load %arg14[%c0_98, %c0_99] : memref<2x32xf32, #tpu.memory_space<vmem>>, vector<2x32xf32>
    tpu.vector_store %arg14[%c0_98, %c0_99], %121 {strides = array<i32>} : memref<2x32xf32, #tpu.memory_space<vmem>>, vector<2x32xf32>,
    return
  }
  func.func @transform_0(%arg0: i32) -> (i32, i32, i32) {
    %c0_i32 = arith.constant 0 : i32
    %c0_i32_0 = arith.constant 0 : i32
    %c0_i32_1 = arith.constant 0 : i32
    return %arg0, %c0_i32, %c0_i32_0 : i32, i32, i32
  }
  func.func @transform_1(%arg0: i32) -> (i32, i32, i32) {
    %c0_i32 = arith.constant 0 : i32
    %c0_i32_0 = arith.constant 0 : i32
    %c0_i32_1 = arith.constant 0 : i32
    %c0_i32_2 = arith.constant 0 : i32
    return %c0_i32, %c0_i32_0, %c0_i32_1 : i32, i32, i32
  }
  func.func @transform_2(%arg0: i32) -> (i32, i32) {
    %c0_i32 = arith.constant 0 : i32
    %c0_i32_0 = arith.constant 0 : i32
    %c0_i32_1 = arith.constant 0 : i32
    return %c0_i32, %c0_i32_0 : i32, i32
  }
  func.func @transform_3(%arg0: i32) -> (i32, i32, i32) {
    %c0_i32 = arith.constant 0 : i32
    %c0_i32_0 = arith.constant 0 : i32
    %c0_i32_1 = arith.constant 0 : i32
    %c0_i32_2 = arith.constant 0 : i32
    return %c0_i32, %c0_i32_0, %c0_i32_1 : i32, i32, i32
  }
  func.func @transform_4(%arg0: i32) -> (i32, i32) {
    %c0_i32 = arith.constant 0 : i32
    %c0_i32_0 = arith.constant 0 : i32
    %c0_i32_1 = arith.constant 0 : i32
    return %c0_i32, %c0_i32_0 : i32, i32
  }
  func.func @transform_5(%arg0: i32) -> (i32, i32) {
    %c0_i32 = arith.constant 0 : i32
    %c0_i32_0 = arith.constant 0 : i32
    %c0_i32_1 = arith.constant 0 : i32
    return %c0_i32, %c0_i32_0 : i32, i32
  }
  func.func @transform_6(%arg0: i32) -> (i32, i32) {
    %c0_i32 = arith.constant 0 : i32
    %c0_i32_0 = arith.constant 0 : i32
    %c0_i32_1 = arith.constant 0 : i32
    return %c0_i32, %c0_i32_0 : i32, i32
  }
  func.func @transform_7(%arg0: i32) -> (i32, i32, i32) {
    %c0_i32 = arith.constant 0 : i32
    %c0_i32_0 = arith.constant 0 : i32
    %c0_i32_1 = arith.constant 0 : i32
    %c0_i32_2 = arith.constant 0 : i32
    return %c0_i32, %c0_i32_0, %c0_i32_1 : i32, i32, i32
  }
  func.func @transform_8(%arg0: i32) -> (i32, i32) {
    %c0_i32 = arith.constant 0 : i32
    %c0_i32_0 = arith.constant 0 : i32
    %c0_i32_1 = arith.constant 0 : i32
    return %c0_i32, %c0_i32_0 : i32, i32
  }
  func.func @transform_9(%arg0: i32) -> (i32, i32, i32) {
    %c0_i32 = arith.constant 0 : i32
    %c0_i32_0 = arith.constant 0 : i32
    %c0_i32_1 = arith.constant 0 : i32
    %c0_i32_2 = arith.constant 0 : i32
    return %c0_i32, %c0_i32_0, %c0_i32_1 : i32, i32, i32
  }
  func.func @transform_10(%arg0: i32) -> (i32, i32) {
    %c0_i32 = arith.constant 0 : i32
    %c0_i32_0 = arith.constant 0 : i32
    %c0_i32_1 = arith.constant 0 : i32
    return %c0_i32, %c0_i32_0 : i32, i32
  }
  func.func @transform_11(%arg0: i32) -> (i32, i32) {
    %c0_i32 = arith.constant 0 : i32
    %c0_i32_0 = arith.constant 0 : i32
    %c0_i32_1 = arith.constant 0 : i32
    return %c0_i32, %c0_i32_0 : i32, i32
  }
  func.func @transform_12(%arg0: i32) -> (i32, i32) {
    %c0_i32 = arith.constant 0 : i32
    %c0_i32_0 = arith.constant 0 : i32
    %c0_i32_1 = arith.constant 0 : i32
    return %c0_i32, %c0_i32_0 : i32, i32
  }
  func.func @transform_13(%arg0: i32) -> (i32, i32) {
    %c0_i32 = arith.constant 0 : i32
    %c0_i32_0 = arith.constant 0 : i32
    return %arg0, %c0_i32 : i32, i32
  }
}

</mosaic_0001>

<bundles_post_ra>
// kernel: tpu_custom_call.1
= control target key start
LH: loop header
LB: loop body
LE: loop exit
PB: predicated region body
PF: predicated region fallthrough
CT: control target
= control target key end

     0   :  { %vm129_vm0 = vcmask 1041408   ;;  %vm46_vm1 = vcmask 31744   ;;  %v1146_v3 = vmov 0.0   ;;  %vm49_vm2 = vcmask 64512   ;;  %s1427_s0 = inlined_call_operand.vmem [shape: f32[2,16,4], index: 0, kind: input, shape index: {}]   ;;  %s1428_s1 = inlined_call_operand.vmem [shape: bf16[2,4,8], index: 1, kind: input, shape index: {}]   ;;  %s1429_s2 = inlined_call_operand.vmem [shape: f32[1,8], index: 2, kind: input, shape index: {}]   ;;  %s1430_s3 = inlined_call_operand.vmem [shape: bf16[2,8,8], index: 3, kind: input, shape index: {}]   ;;  %s1431_s4 = inlined_call_operand.vmem [shape: f32[1,8], index: 4, kind: input, shape index: {}]   ;;  %s1432_s5 = inlined_call_operand.vmem [shape: bf16[4,8], index: 5, kind: input, shape index: {}]   ;;  %s1433_s6 = inlined_call_operand.vmem [shape: f32[1,8], index: 6, kind: input, shape index: {}]   ;;  %s1434_s7 = inlined_call_operand.vmem [shape: bf16[2,8,8], index: 7, kind: input, shape index: {}]   ;;  %s1435_s8 = inlined_call_operand.vmem [shape: f32[1,8], index: 8, kind: input, shape index: {}]   ;;  %s1436_s9 = inlined_call_operand.vmem [shape: bf16[2,8,8], index: 9, kind: input, shape index: {}]   ;;  %s1437_s10 = inlined_call_operand.vmem [shape: f32[1,8], index: 10, kind: input, shape index: {}]   ;;  %s1438_s11 = inlined_call_operand.vmem [shape: bf16[8,32], index: 11, kind: input, shape index: {}]   ;;  %s1439_s12 = inlined_call_operand.vmem [shape: f32[1,32], index: 12, kind: input, shape index: {}]   ;;  %s1440_s13 = inlined_call_operand.hbm [shape: f32[2,32], index: 13, kind: output, shape index: {}]  }
   0x1   :  { %v971_v0 = vld [vmem:[%s1428_s1 + $0x2] sm:$0x3]  ;;  %47 = vst.msk [vmem:[#allocation2] sm:$0xff] %vm46_vm1, %v1146_v3  ;;  %v1234_v4 = vld [vmem:[%s1427_s0 + $0x8] sm:$0xff]  ;;  %48 = vst.msk [vmem:[#allocation2 + $0x18] sm:$0xff] %vm46_vm1, %v1146_v3 }
   0x2   :  { %v1225_v1 = vld [vmem:[%s1427_s0] sm:$0xff]  ;;  %1106 = vmatprep.subr.msk.bf16.mxu0 %vm129_vm0, %v971_v0  ;;  %v131_v2 = vsel %vm129_vm0, %v971_v0, 0  ;;  %v1246_v6 = vld [vmem:[%s1427_s0 + $0x10] sm:$0xff]  ;;  %61 = vst.msk [vmem:[#allocation2 + $0x10] sm:$0xff] %vm46_vm1, %v1234_v4  ;;  %v1253_v7 = vld [vmem:[%s1427_s0 + $0x18] sm:$0xff] }
   0x3   :  { %60 = vst.msk [vmem:[#allocation2 + $0x8] sm:$0xff] %vm46_vm1, %v1225_v1  ;;  %v109_v5 = vld [vmem:[%s1428_s1] sm:$0x3]  ;;  %1031 = vmatpush3.bf16.msra.mxu0 %v131_v2  ;;  %62 = vst.msk [vmem:[#allocation2 + $0x20] sm:$0xff] %vm46_vm1, %v1246_v6 }
   0x4   :  { %1107 = vmatprep.subr.msk.bf16.mxu0 %vm129_vm0, %v109_v5  ;;  %63 = vst.msk [vmem:[#allocation2 + $0x28] sm:$0xff] %vm46_vm1, %v1253_v7 }
   0x5   :  { %50 = vst.msk [vmem:[#allocation3] sm:$0xff] %vm49_vm2, %v1146_v3  ;;  %51 = vst.msk [vmem:[#allocation3 + $0x18] sm:$0xff] %vm49_vm2, %v1146_v3 }
   0x6   :  { %52 = vst.msk [vmem:[#allocation4] sm:$0xff] %vm49_vm2, %v1146_v3  ;;  %53 = vst.msk [vmem:[#allocation4 + $0x18] sm:$0xff] %vm49_vm2, %v1146_v3 }
   0x7   :  { %54 = vst.msk [vmem:[#allocation5] sm:$0xff] %vm49_vm2, %v1146_v3  ;;  %55 = vst.msk [vmem:[#allocation5 + $0x18] sm:$0xff] %vm49_vm2, %v1146_v3 }
   0x8   :  { %18 = vsyncpa [#allocation7], 0  ;;  %v64_v8 = vld [vmem:[#allocation2] sm:$0xff]  ;;  %v67_v10 = vld [vmem:[#allocation2 + $0x18] sm:$0xff]  ;;  %vm114_vm3 = vcmask 1043456   ;;  %v189_v17 = vsel %vm129_vm0, %v109_v5, 0  ;;  %v448_v51 = vpack.c.bf16 %v1234_v4, %v1225_v1  ;;  %v449_v53 = vpack.c.bf16 %v1253_v7, %v1246_v6 }
   0x9   :  { %v66_v11 = vld [vmem:[#allocation2 + $0x10] sm:$0xff]  ;;  %vm74_vm4 = vsmask.f32 4352  ;;  %v977_v47 = vld [vmem:[%s1430_s3 + $0x4] sm:$0xf]  ;;  %vm546_vm5 = vcmask 1044480  }
   0xa   :  { %v65_v9 = vld [vmem:[#allocation2 + $0x8] sm:$0xff]  ;;  %v68_v13 = vld [vmem:[#allocation2 + $0x20] sm:$0xff]  ;;  %v71_v14 = vpack.c.bf16 %v66_v11, %v66_v11  ;;  %1108 = vmatprep.subr.msk.bf16.mxu1 %vm114_vm3, %v977_v47  ;;  %v324_v48 = vsel %vm114_vm3, %v977_v47, 0  ;;  %vm1147_vm6 = vmmov 0   ;;  %vm900_vm7 = vcmask 1041409   ;;  %s1148_s19 = smov [#allocation6]  }
   0xb   :  { %v70_v12 = vpack.c.bf16 %v65_v9, %v64_v8  ;;  %v69_v15 = vld [vmem:[#allocation2 + $0x28] sm:$0xff]  ;;  %v72_v16 = vpack.c.bf16 %v68_v13, %v67_v10  ;;  %1043 = vmatpush3.bf16.msra.mxu1 %v324_v48  ;;  %v303_v49 = vld [vmem:[%s1430_s3] sm:$0xf]  ;;  %v986_v47 = vld [vmem:[%s1434_s7 + $0x4] sm:$0xf]  ;;  %s963_s0 = sshll.u32 %s1148_s19, 4  ;;  %s964_s0 = int_to_ptr.vmem [resolvable:$true] %s963_s0 }
   0xc   :  { %v73_v19 = vpack.c.bf16 %v69_v15, %v69_v15  ;;  %v116_v22 = vrot.slane %v71_v14, 4  ;;  %v84_v24 = vshrl.u32 %v71_v14, 16  ;;  %v87_v25 = vshll.u32 %v71_v14, 16  ;;  %1109 = vmatprep.subr.msk.bf16.mxu1 %vm114_vm3, %v303_v49  ;;  %v450_v50 = vld [vmem:[%s1432_s5] sm:$0x3]  ;;  %v259_v4 = vld [vmem:[#allocation3] sm:$0xff]  ;;  %p1127_p1 = scmp.lt.s32.totalorder %s964_s0, %s964_s0 }
   0xd   :  { %v115_v18 = vrot.slane %v70_v12, 4  ;;  %v76_v20 = vshrl.u32 %v70_v12, 16  ;;  %v79_v21 = vshll.u32 %v70_v12, 16  ;;  %v118_v23 = vrot.slane %v72_v16, 4  ;;  %v976_v54 = vld [vmem:[%s1429_s2] ss:$0 sm:$0xff] }
   0xe   :  { %v119_v26 = vrot.slane %v73_v19, 4  ;;  %v93_v29 = vshrl.u32 %v72_v16, 16  ;;  %v86_v31 = vrot.slane %v84_v24, 3  ;;  %v89_v32 = vrot.slane %v87_v25, 4  ;;  %v262_v5 = vld [vmem:[#allocation3 + $0x18] sm:$0xff]  ;;  %s1122_s1 = scalar_lea.vmem %s964_s0, 32 }
   0xf   :  { %v78_v27 = vrot.slane %v76_v20, 3  ;;  %v81_v28 = vrot.slane %v79_v21, 4  ;;  %v117_v30 = vsel %vm114_vm3, %v115_v18, %v116_v22  ;;  %v96_v33 = vshll.u32 %v72_v16, 16  ;;  %p1123_p0 = scmp.ne.s32.totalorder %s964_s0, %s1122_s1  ;;  %p1128_p2 = scmp.lt.s32.totalorder %s1122_s1, %s1122_s1 }
  0x10   :  { %1032 = vmatprep.mubr.msk.bf16.mxu0 %vm46_vm1, %v117_v30  ;;  %v120_v34 = vsel %vm114_vm3, %v118_v23, %v119_v26  ;;  %v101_v36 = vshrl.u32 %v73_v19, 16  ;;  %v90_v37 = vor.u32 %v89_v32, %v86_v31  ;;  %v104_v38 = vshll.u32 %v73_v19, 16 }
  0x11   :  { %v82_v35 = vor.u32 %v81_v28, %v78_v27  ;;  %1033 = vmatmul.mubr.msk.bf16.vlgmr.msra.gmra.mrb[0].mxu0 %vm46_vm1, %v120_v34  ;;  %v95_v39 = vrot.slane %v93_v29, 3  ;;  %v98_v40 = vrot.slane %v96_v33, 4  ;;  %v458_v52 = vsel %vm129_vm0, %v450_v50, 0  ;;  %p1129_p3 = por %p1128_p2, %p1127_p1 }
  0x12   :  { %1037 = vmatpush3.bf16.msra.mxu0 %v189_v17  ;;  %v103_v41 = vrot.slane %v101_v36, 3  ;;  %v106_v43 = vrot.slane %v104_v38, 4  ;;  %v382_v25 = vsel %vm114_vm3, %v303_v49, 0  ;;  %v569_v48 = vsel %vm114_vm3, %v986_v47, 0  ;;  %v553_v49 = vld [vmem:[%s1434_s7] sm:$0xf] }
  0x13   :  { %v91_v42 = vsel %vm74_vm4, %v82_v35, %v90_v37  ;;  %v99_v44 = vor.u32 %v98_v40, %v95_v39  ;;  %1110 = vmatprep.subr.msk.bf16.mxu0 %vm129_vm0, %v450_v50  ;;  %v985_v50 = vld [vmem:[%s1433_s6] ss:$0 sm:$0xff]  ;;  %vm955_vm8 = vcmask 254976   ;;  %p1130_p4 = pnand %p1129_p3, %p1123_p0 }
  0x14   :  { %1038 = vmatprep.mubr.msk.bf16.mxu0 %vm46_vm1, %v91_v42  ;;  %v107_v45 = vor.u32 %v106_v43, %v103_v41 }
  0x16   :  { %v108_v46 = vsel %vm74_vm4, %v99_v44, %v107_v45 }
  0x1d   :  { %1039 = vmatmul.mubr.msk.bf16.vlgmr.msra.gmra.mrb[0].mxu0 %vm46_vm1, %v108_v46 }
  0x1e   :  { %1055 = vmatpush3.bf16.msra.mxu0 %v458_v52  ;;  %1056 = vmatprep.mubr.msk.bf16.mxu0 %vm46_vm1, %v448_v51  ;;  %v982_v51 = vld [vmem:[%s1431_s4] ss:$0 sm:$0xff] }
  0x25   :  { %1057 = vmatmul.mubr.msk.bf16.vlgmr.msra.gmra.mrb[4].mxu0 %vm46_vm1, %v449_v53 }
  0xf0   :  { %v1040_v55 = vpop.f32.mrb[0].mxu0 }
  0xf1   :  { %v249_v56 = vadd.f32 %v1040_v55, %v976_v54  ;;  %v225_v57 = vpop.f32.mrb[1].mxu0 }
  0xf2   :  { %v247_v58 = vadd.f32 %v976_v54, %v225_v57  ;;  %v1041_v59 = vpop.f32.mrb[2].mxu0 }
  0xf3   :  { %v253_v60 = vmax.f32 %v249_v56, 0.0  ;;  %v250_v61 = vadd.f32 %v1041_v59, %v976_v54  ;;  %v228_v62 = vpop.f32.mrb[3].mxu0 }
  0xf4   :  { %v251_v63 = vmax.f32 %v247_v58, 0.0  ;;  %v248_v0 = vadd.f32 %v976_v54, %v228_v62 }
  0xf5   :  { %257 = vst.msk [vmem:[#allocation3 + $0x20] sm:$0xff] %vm49_vm2, %v253_v60  ;;  %v254_v1 = vmax.f32 %v250_v61, 0.0 }
  0xf6   :  { %255 = vst.msk [vmem:[#allocation3 + $0x8] sm:$0xff] %vm49_vm2, %v251_v63  ;;  %v252_v2 = vmax.f32 %v248_v0, 0.0 }
  0xf7   :  { %258 = vst.msk [vmem:[#allocation3 + $0x28] sm:$0xff] %vm49_vm2, %v254_v1 }
  0xf8   :  { %256 = vst.msk [vmem:[#allocation3 + $0x10] sm:$0xff] %vm49_vm2, %v252_v2  ;;  %v1058_v43 = vpop.f32.mrb[4].mxu0 }
  0xf9   :  { %v494_v44 = vpop.f32.mrb[5].mxu0  ;;  %v518_v53 = vadd.f32 %v1058_v43, %v985_v50 }
  0xfa   :  { %v1059_v45 = vpop.f32.mrb[6].mxu0  ;;  %v516_v56 = vadd.f32 %v985_v50, %v494_v44 }
  0xfb   :  { %v497_v46 = vpop.f32.mrb[7].mxu0  ;;  %v519_v1 = vadd.f32 %v1059_v45, %v985_v50 }
  0xfc   :  { %v263_v6 = vld [vmem:[#allocation3 + $0x20] sm:$0xff] }
  0xfd   :  { %v260_v7 = vld [vmem:[#allocation3 + $0x8] sm:$0xff]  ;;  %v267_v11 = vpack.c.bf16 %v263_v6, %v262_v5  ;;  %v517_v5 = vadd.f32 %v985_v50, %v497_v46 }
  0xfe   :  { %v265_v8 = vpack.c.bf16 %v260_v7, %v259_v4  ;;  %v264_v9 = vld [vmem:[#allocation3 + $0x28] sm:$0xff] }
  0xff   :  { %v261_v10 = vld [vmem:[#allocation3 + $0x10] sm:$0xff]  ;;  %v268_v12 = vpack.c.bf16 %v264_v9, %v264_v9  ;;  %v311_v20 = vrot.slane %v267_v11, 4  ;;  %v287_v33 = vshrl.u32 %v267_v11, 16  ;;  %v290_v34 = vshll.u32 %v267_v11, 16 }
 0x100   :  { %v266_v13 = vpack.c.bf16 %v261_v10, %v261_v10  ;;  %v270_v14 = vshrl.u32 %v265_v8, 16  ;;  %v273_v15 = vshll.u32 %v265_v8, 16  ;;  %v308_v17 = vrot.slane %v265_v8, 4 }
 0x101   :  { %v312_v16 = vrot.slane %v268_v12, 4  ;;  %v295_v29 = vshrl.u32 %v268_v12, 16  ;;  %v298_v30 = vshll.u32 %v268_v12, 16  ;;  %v289_v38 = vrot.slane %v287_v33, 3 }
 0x102   :  { %v309_v18 = vrot.slane %v266_v13, 4  ;;  %v278_v19 = vshrl.u32 %v266_v13, 16  ;;  %v272_v21 = vrot.slane %v270_v14, 3  ;;  %v275_v22 = vrot.slane %v273_v15, 4  ;;  %v535_v14 = vld [vmem:[#allocation4 + $0x18] sm:$0xff] }
 0x103   :  { %v281_v23 = vshll.u32 %v266_v13, 16  ;;  %v313_v27 = vsel %vm114_vm3, %v311_v20, %v312_v16  ;;  %v297_v36 = vrot.slane %v295_v29, 3  ;;  %v300_v37 = vrot.slane %v298_v30, 4  ;;  %v532_v13 = vld [vmem:[#allocation4] sm:$0xff] }
 0x104   :  { %v310_v24 = vsel %vm114_vm3, %v308_v17, %v309_v18  ;;  %v280_v26 = vrot.slane %v278_v19, 3  ;;  %v276_v31 = vor.u32 %v275_v22, %v272_v21  ;;  %v292_v39 = vrot.slane %v290_v34, 4 }
 0x105   :  { %1044 = vmatprep.mubr.msk.bf16.mxu1 %vm49_vm2, %v310_v24  ;;  %v283_v28 = vrot.slane %v281_v23, 4  ;;  %v301_v40 = vor.u32 %v300_v37, %v297_v36  ;;  %v627_v29 = vsel %vm114_vm3, %v553_v49, 0  ;;  %v992_v36 = vld [vmem:[%s1436_s9 + $0x4] sm:$0xf] }
 0x106   :  { %1045 = vmatmul.mubr.msk.bf16.vlgmr.msra.gmra.mrb[0].mxu1 %vm49_vm2, %v313_v27  ;;  %v293_v41 = vor.u32 %v292_v39, %v289_v38  ;;  %1113 = vmatprep.subr.msk.bf16.mxu0 %vm114_vm3, %v992_v36  ;;  %v733_v37 = vsel %vm114_vm3, %v992_v36, 0  ;;  %v717_v38 = vld [vmem:[%s1436_s9] sm:$0xf] }
 0x107   :  { %1049 = vmatpush3.bf16.msra.mxu1 %v382_v25  ;;  %v284_v32 = vor.u32 %v283_v28, %v280_v26  ;;  %1073 = vmatpush3.bf16.msra.mxu0 %v733_v37  ;;  %v991_v39 = vld [vmem:[%s1435_s8] ss:$0 sm:$0xff] }
 0x108   :  { %v302_v42 = vsel %vm74_vm4, %v293_v41, %v301_v40  ;;  %1111 = vmatprep.subr.msk.bf16.mxu1 %vm114_vm3, %v986_v47  ;;  %1114 = vmatprep.subr.msk.bf16.mxu0 %vm114_vm3, %v717_v38 }
 0x109   :  { %v285_v35 = vsel %vm74_vm4, %v276_v31, %v284_v32 }
 0x10a   :  { %1050 = vmatprep.mubr.msk.bf16.mxu1 %vm49_vm2, %v285_v35 }
 0x112   :  { %1051 = vmatmul.mubr.msk.bf16.vlgmr.msra.gmra.mrb[0].mxu1 %vm49_vm2, %v302_v42 }
 0x113   :  { %1061 = vmatpush3.bf16.msra.mxu1 %v569_v48 }
 0x114   :  { %1112 = vmatprep.subr.msk.bf16.mxu1 %vm114_vm3, %v553_v49 }
 0x1e5   :  { %v1052_v52 = vpop.f32.mrb[0].mxu1 }
 0x1e6   :  { %v442_v54 = vadd.f32 %v1052_v52, %v982_v51  ;;  %v418_v55 = vpop.f32.mrb[1].mxu1  ;;  %v697_v52 = vld [vmem:[#allocation5] sm:$0xff] }
 0x1e7   :  { %v440_v57 = vadd.f32 %v982_v51, %v418_v55  ;;  %v1053_v58 = vpop.f32.mrb[2].mxu1 }
 0x1e8   :  { %v446_v59 = vmax.f32 %v442_v54, 0.0  ;;  %v443_v60 = vadd.f32 %v1053_v58, %v982_v51  ;;  %v421_v61 = vpop.f32.mrb[3].mxu1 }
 0x1e9   :  { %v444_v62 = vmax.f32 %v440_v57, 0.0  ;;  %v441_v63 = vadd.f32 %v982_v51, %v421_v61 }
 0x1ea   :  { %v1332_v0 = vadd.f32 %v518_v53, %v446_v59  ;;  %v447_v2 = vmax.f32 %v443_v60, 0.0  ;;  %v700_v53 = vld [vmem:[#allocation5 + $0x18] sm:$0xff] }
 0x1eb   :  { %v1334_v4 = vadd.f32 %v516_v56, %v444_v62  ;;  %v445_v6 = vmax.f32 %v441_v63, 0.0 }
 0x1ec   :  { %v526_v7 = vmax.f32 %v1332_v0, 0.0  ;;  %v1337_v8 = vadd.f32 %v519_v1, %v447_v2 }
 0x1ed   :  { %v524_v9 = vmax.f32 %v1334_v4, 0.0  ;;  %v1340_v10 = vadd.f32 %v517_v5, %v445_v6 }
 0x1ee   :  { %530 = vst.msk [vmem:[#allocation4 + $0x20] sm:$0xff] %vm49_vm2, %v526_v7  ;;  %v527_v11 = vmax.f32 %v1337_v8, 0.0 }
 0x1ef   :  { %528 = vst.msk [vmem:[#allocation4 + $0x8] sm:$0xff] %vm49_vm2, %v524_v9  ;;  %v525_v12 = vmax.f32 %v1340_v10, 0.0 }
 0x1f0   :  { %531 = vst.msk [vmem:[#allocation4 + $0x28] sm:$0xff] %vm49_vm2, %v527_v11 }
 0x1f1   :  { %529 = vst.msk [vmem:[#allocation4 + $0x10] sm:$0xff] %vm49_vm2, %v525_v12 }
 0x1f5   :  { %v536_v15 = vld [vmem:[#allocation4 + $0x20] sm:$0xff] }
 0x1f6   :  { %v533_v16 = vld [vmem:[#allocation4 + $0x8] sm:$0xff]  ;;  %v540_v20 = vpack.c.bf16 %v536_v15, %v535_v14 }
 0x1f7   :  { %v538_v17 = vpack.c.bf16 %v533_v16, %v532_v13  ;;  %v537_v18 = vld [vmem:[#allocation4 + $0x28] sm:$0xff]  ;;  %v791_v13 = vsel %vm114_vm3, %v717_v38, 0 }
 0x1f8   :  { %v534_v19 = vld [vmem:[#allocation4 + $0x10] sm:$0xff]  ;;  %v541_v21 = vpack.c.bf16 %v537_v18, %v537_v18  ;;  %v557_v27 = vrot.slane %v540_v20, 4  ;;  %v550_v34 = vrot.slane %v540_v20, 3  ;;  %v888_v20 = vld [vmem:[%s1438_s11] sm:$0xf] }
 0x1f9   :  { %v539_v22 = vpack.c.bf16 %v534_v19, %v534_v19  ;;  %v554_v24 = vrot.slane %v538_v17, 4  ;;  %v547_v30 = vrot.slane %v538_v17, 3 }
 0x1fa   :  { %v558_v23 = vrot.slane %v541_v21, 4  ;;  %v551_v33 = vrot.slane %v541_v21, 3  ;;  %v907_v21 = vsel %vm114_vm3, %v888_v20, 0 }
 0x1fb   :  { %v555_v25 = vrot.slane %v539_v22, 4  ;;  %v548_v26 = vrot.slane %v539_v22, 3  ;;  %v997_v22 = vld [vmem:[%s1437_s10] ss:$0 sm:$0xff] }
 0x1fc   :  { %v559_v31 = vsel %vm114_vm3, %v557_v27, %v558_v23  ;;  %v552_v35 = vsel %vm546_vm5, %v550_v34, %v551_v33 }
 0x1fd   :  { %v556_v28 = vsel %vm114_vm3, %v554_v24, %v555_v25  ;;  %v549_v32 = vsel %vm546_vm5, %v547_v30, %v548_v26 }
 0x1fe   :  { %1062 = vmatprep.mubr.msk.bf16.mxu1 %vm49_vm2, %v556_v28 }
 0x1ff   :  { %1063 = vmatmul.mubr.msk.bf16.vlgmr.msra.gmra.mrb[4].mxu1 %vm49_vm2, %v559_v31 }
 0x200   :  { %1067 = vmatpush3.bf16.msra.mxu1 %v627_v29  ;;  %1068 = vmatprep.mubr.msk.bf16.mxu1 %vm49_vm2, %v549_v32 }
 0x201   :  { %1084 = vmatprep.subr.bf16.mxu1 %v1146_v3 }
 0x20b   :  { %1069 = vmatmul.mubr.msk.bf16.vlgmr.msra.gmra.mrb[4].mxu1 %vm49_vm2, %v552_v35 }
 0x20c   :  { %1086 = vmatprep.mubr.msk.bf16.mxu1 %vm1147_vm6, %v1146_v3  ;;  %1085 = vmatpush3.bf16.msra.mxu1 %v907_v21 }
 0x2de   :  { %v1070_v40 = vpop.f32.mrb[4].mxu1 }
 0x2df   :  { %v687_v41 = vadd.f32 %v1070_v40, %v991_v39  ;;  %v663_v42 = vpop.f32.mrb[5].mxu1 }
 0x2e0   :  { %v685_v43 = vadd.f32 %v991_v39, %v663_v42  ;;  %v1071_v44 = vpop.f32.mrb[6].mxu1 }
 0x2e1   :  { %v691_v45 = vmax.f32 %v687_v41, 0.0  ;;  %v688_v46 = vadd.f32 %v1071_v44, %v991_v39  ;;  %v666_v47 = vpop.f32.mrb[7].mxu1 }
 0x2e2   :  { %v689_v48 = vmax.f32 %v685_v43, 0.0  ;;  %v686_v49 = vadd.f32 %v991_v39, %v666_v47 }
 0x2e3   :  { %695 = vst.msk [vmem:[#allocation5 + $0x20] sm:$0xff] %vm49_vm2, %v691_v45  ;;  %v692_v50 = vmax.f32 %v688_v46, 0.0 }
 0x2e4   :  { %693 = vst.msk [vmem:[#allocation5 + $0x8] sm:$0xff] %vm49_vm2, %v689_v48  ;;  %v690_v51 = vmax.f32 %v686_v49, 0.0 }
 0x2e5   :  { %696 = vst.msk [vmem:[#allocation5 + $0x28] sm:$0xff] %vm49_vm2, %v692_v50 }
 0x2e6   :  { %694 = vst.msk [vmem:[#allocation5 + $0x10] sm:$0xff] %vm49_vm2, %v690_v51 }
 0x2ea   :  { %v701_v54 = vld [vmem:[#allocation5 + $0x20] sm:$0xff] }
 0x2eb   :  { %v698_v55 = vld [vmem:[#allocation5 + $0x8] sm:$0xff]  ;;  %v705_v59 = vpack.c.bf16 %v701_v54, %v700_v53 }
 0x2ec   :  { %v703_v56 = vpack.c.bf16 %v698_v55, %v697_v52  ;;  %v702_v57 = vld [vmem:[#allocation5 + $0x28] sm:$0xff] }
 0x2ed   :  { %v699_v58 = vld [vmem:[#allocation5 + $0x10] sm:$0xff]  ;;  %v706_v60 = vpack.c.bf16 %v702_v57, %v702_v57  ;;  %v721_v5 = vrot.slane %v705_v59, 4  ;;  %v714_v18 = vrot.slane %v705_v59, 3 }
 0x2ee   :  { %v704_v61 = vpack.c.bf16 %v699_v58, %v699_v58  ;;  %v718_v63 = vrot.slane %v703_v56, 4  ;;  %v711_v14 = vrot.slane %v703_v56, 3 }
 0x2ef   :  { %v722_v62 = vrot.slane %v706_v60, 4  ;;  %v715_v17 = vrot.slane %v706_v60, 3  ;;  %v998_v60 = vld [vmem:[%s1439_s12] ss:$0 sm:$0xff] }
 0x2f0   :  { %v719_v1 = vrot.slane %v704_v61, 4  ;;  %v712_v2 = vrot.slane %v704_v61, 3 }
 0x2f1   :  { %v723_v15 = vsel %vm114_vm3, %v721_v5, %v722_v62  ;;  %v716_v19 = vsel %vm546_vm5, %v714_v18, %v715_v17 }
 0x2f2   :  { %v720_v6 = vsel %vm114_vm3, %v718_v63, %v719_v1  ;;  %v713_v16 = vsel %vm546_vm5, %v711_v14, %v712_v2 }
 0x2f3   :  { %1074 = vmatprep.mubr.msk.bf16.mxu0 %vm49_vm2, %v720_v6 }
 0x2f4   :  { %1075 = vmatmul.mubr.msk.bf16.vlgmr.msra.gmra.mrb[8].mxu0 %vm49_vm2, %v723_v15 }
 0x2f5   :  { %1079 = vmatpush3.bf16.msra.mxu0 %v791_v13  ;;  %1080 = vmatprep.mubr.msk.bf16.mxu0 %vm49_vm2, %v713_v16 }
 0x300   :  { %1081 = vmatmul.mubr.msk.bf16.vlgmr.msra.gmra.mrb[8].mxu0 %vm49_vm2, %v716_v19 }
 0x3d3   :  { %v1082_v23 = vpop.f32.mrb[8].mxu0 }
 0x3d4   :  { %v851_v24 = vadd.f32 %v1082_v23, %v997_v22  ;;  %v827_v25 = vpop.f32.mrb[9].mxu0 }
 0x3d5   :  { %v849_v26 = vadd.f32 %v997_v22, %v827_v25  ;;  %v1083_v27 = vpop.f32.mrb[10].mxu0 }
 0x3d6   :  { %v855_v28 = vmax.f32 %v851_v24, 0.0  ;;  %v852_v29 = vadd.f32 %v1083_v27, %v997_v22  ;;  %v830_v30 = vpop.f32.mrb[11].mxu0 }
 0x3d7   :  { %v853_v31 = vmax.f32 %v849_v26, 0.0  ;;  %v850_v32 = vadd.f32 %v997_v22, %v830_v30 }
 0x3d8   :  { %v859_v33 = vadd.f32 %v855_v28, %v526_v7  ;;  %v856_v34 = vmax.f32 %v852_v29, 0.0 }
 0x3d9   :  { %v857_v3 = vadd.f32 %v853_v31, %v524_v9  ;;  %v854_v35 = vmax.f32 %v850_v32, 0.0 }
 0x3da   :  { %v863_v36 = vmax.f32 %v859_v33, 0.0  ;;  %v860_v37 = vadd.f32 %v856_v34, %v527_v11 }
 0x3db   :  { %v861_v38 = vmax.f32 %v857_v3, 0.0  ;;  %v858_v39 = vadd.f32 %v854_v35, %v525_v12 }
 0x3dc   :  { %v864_v40 = vmax.f32 %v860_v37, 0.0  ;;  %v874_v42 = vsel %vm49_vm2, %v863_v36, 0.0 }
 0x3dd   :  { %v862_v41 = vmax.f32 %v858_v39, 0.0  ;;  %v865_v7 = vsel %vm49_vm2, %v861_v38, 0.0 }
 0x3de   :  { %v875_v0 = vsel %vm49_vm2, %v864_v40, 0.0 }
 0x3df   :  { %v876_v43 = vadd.f32 %v875_v0, %v874_v42  ;;  %v866_v4 = vsel %vm49_vm2, %v862_v41, 0.0 }
 0x3e0   :  { %v867_v9 = vadd.f32 %v866_v4, %v865_v7 }
 0x3e1   :  { %v877_v44 = vrot.slane %v876_v43, 4 }
 0x3e2   :  { %v868_v45 = vrot.slane %v867_v9, 4 }
 0x3e3   :  { %v878_v8 = vadd.f32 %v877_v44, %v876_v43 }
 0x3e4   :  { %v869_v11 = vadd.f32 %v868_v45, %v867_v9 }
 0x3e5   :  { %v879_v46 = vrot.slane %v878_v8, 2 }
 0x3e6   :  { %v870_v47 = vrot.slane %v869_v11, 2 }
 0x3e7   :  { %v880_v10 = vadd.f32 %v879_v46, %v878_v8 }
 0x3e8   :  { %v871_v12 = vadd.f32 %v870_v47, %v869_v11 }
 0x3e9   :  { %v881_v48 = vrot.slane %v880_v10, 1 }
 0x3ea   :  { %v872_v49 = vrot.slane %v871_v12, 1 }
 0x3eb   :  { %v882_v50 = vadd.f32 %v881_v48, %v880_v10 }
 0x3ec   :  { %v873_v51 = vadd.f32 %v872_v49, %v871_v12 }
 0x3ed   :  { %v885_v52 = vmul.f32 0.0625, %v882_v50 }
 0x3ee   :  { %v884_v53 = vmul.f32 0.0625, %v873_v51 }
 0x3ef   :  { %v887_v54 = vpack.c.bf16 %v885_v52, %v885_v52 }
 0x3f0   :  { %v886_v55 = vpack.c.bf16 %v884_v53, %v884_v53 }
 0x3f1   :  { %v899_v56 = vunpack.c.l.b16 %v887_v54 }
 0x3f2   :  { %v898_v57 = vunpack.c.l.b16 %v886_v55 }
 0x3f4   :  { %v901_v58 = vsel %vm900_vm7, %v899_v56, %v898_v57 }
 0x3f5   :  { %v902_v59 = vpack.c.b16 %v901_v58, %v901_v58 }
 0x3f7   :  { %1087 = vmatmul.mubr.msk.bf16.vlgmr.msra.gmra.mrb[8].mxu1 %vm49_vm2, %v902_v59 }
 0x4ca   :  { %v943_v61 = vpop.f32.mrb[8].mxu1 }
 0x4cb   :  { %v944_v62 = vadd.f32 %v998_v60, %v943_v61  ;;  %v1088_v63 = vpop.f32.mrb[9].mxu1 }
 0x4cc   :  { %v946_v1 = vpop.f32.mrb[10].mxu1 }
 0x4cd   :  { %v1000_v2 = vmul.f32 -1.442695, %v944_v62  ;;  %v1089_v5 = vpop.f32.mrb[11].mxu1 }
 0x4cf   :  { %1118 = vpow2.f32 %v1000_v2 }
 0x4d9   :  { %v1119_v6 = vpop.eup %1118 }
 0x4da   :  { %v952_v13 = vadd.f32 1.0, %v1119_v6 }
 0x4dc   :  { %1120 = vrcp.f32 %v952_v13 }
 0x4e6   :  { %v1121_v14 = vpop.eup %1120 }
 0x4e7   :  { %956 = vst.msk [vmem:[#allocation6] sm:$0x3] %vm955_vm8, %v1121_v14 }
 0x4e8   :  { %1133 = shalt.err (!%p1130_p4)
}
 0x4e9   :  { %s1134_s21 = scalar_lea.hbm %s1440_s13, 32 }
 0x4ea   :  { %p1135_p5 = scmp.ne.s32.totalorder %s1440_s13, %s1134_s21  ;;  %p1138_p6 = scmp.lt.u32.totalorder %s1134_s21, %s1440_s13 }
 0x4ec   :  { %p1140_p7 = pnand %p1138_p6, %p1135_p5 }
 0x4ee   :  { %1143 = shalt.err (!%p1140_p7)
}
 0x4ef   :  { %966 = dma.vmem_to_hbm [thread:$0]  %s964_s0, 32, %s1440_s13, [#allocation7]  }
 0x4f0   :  { %1144 = dma.done.wait [#allocation7], 32  }
 0x4f1   :  { %1145 = vsyncadd [#allocation7], 4294967264 }
 0x4f2   :  { %970 = vsyncpa [#allocation7], 1 }

</bundles_post_ra>
